<compile_context>
chip_gen: v6e
topology: v6e:2x2x1
jax: 0.10.0
libtpu: 0.0.40
codegen_flags: <defaults>
</compile_context>

<pallas_src>
import functools

import jax
import jax.numpy as jnp
from jax.experimental import pallas as pl
from jax.experimental.pallas import tpu as pltpu


def _round_up(x, m):
    return (x + m - 1) // m * m


def _make_kernel(nk):
    """Build the fused normalize+linear kernel for a grid with nk k-steps."""
    if nk == 1:
        # No reduction loop: single matmul, no pl.when / accumulator needed.
        def kernel(x_ref, mean_ref, inv_std_ref, w_ref, b_ref, o_ref):
            norm = (x_ref[...] - mean_ref[...]) * inv_std_ref[...]
            o_ref[...] = jnp.dot(norm.astype(w_ref.dtype), w_ref[...],
                                 preferred_element_type=jnp.float32) + b_ref[...]
    else:
        # k (reduction) is the innermost grid axis; o_ref block index is fixed
        # across k, so o_ref stays VMEM-resident -> accumulate into it directly.
        def kernel(x_ref, mean_ref, inv_std_ref, w_ref, b_ref, o_ref):
            k = pl.program_id(2)

            @pl.when(k == 0)
            def _():
                o_ref[...] = jnp.broadcast_to(b_ref[...], o_ref.shape)

            norm = (x_ref[...] - mean_ref[...]) * inv_std_ref[...]
            o_ref[...] += jnp.dot(norm.astype(w_ref.dtype), w_ref[...],
                                  preferred_element_type=jnp.float32)
    return kernel


def make_normalized_linear(mean, std, w, b, *, dot_dtype=jnp.bfloat16,
                           max_tb=256, max_tk=2048, max_tn=256):
    """One-time setup: pre-pad/cast all static operands, pick tiles, return a
    jitted forward(x) closure (x: [B, C, H, W] f32 -> [B, N] f32)."""
    C = int(mean.reshape(-1).shape[0])
    K, N = w.shape
    HW = K // C

    # ---- tile selection (static) -----------------------------------------
    Kpad = _round_up(K, 128)
    TK = min(Kpad, max_tk)
    Kpad = _round_up(Kpad, TK)

    if N <= 2 * max_tn:
        # Full-array N block (legal even when N % 128 != 0); do NOT inflate a
        # tiny N up to 128 — that would multiply W HBM bytes.
        TN, Npad = N, N
    else:
        TN = max_tn
        Npad = _round_up(N, TN)

    nk = Kpad // TK
    nj = Npad // TN

    # ---- one-time operand prep (hoisted out of the per-call jit path) -----
    mean_flat = jnp.broadcast_to(
        mean.reshape(C, 1).astype(jnp.float32), (C, HW)).reshape(1, K)
    inv_std_flat = jnp.broadcast_to(
        (1.0 / std.astype(jnp.float32)).reshape(C, 1), (C, HW)).reshape(1, K)
    mean_flat = jnp.pad(mean_flat, ((0, 0), (0, Kpad - K)))
    inv_std_flat = jnp.pad(inv_std_flat, ((0, 0), (0, Kpad - K)),
                           constant_values=1.0)
    w_p = jnp.pad(w.astype(jnp.float32),
                  ((0, Kpad - K), (0, Npad - N))).astype(dot_dtype)
    b_p = jnp.pad(b.reshape(1, N).astype(jnp.float32), ((0, 0), (0, Npad - N)))
    mean_flat, inv_std_flat, w_p, b_p = jax.block_until_ready(
        (mean_flat, inv_std_flat, w_p, b_p))

    kernel = _make_kernel(nk)

    @jax.jit
    def forward(x):
        B = x.shape[0]
        TB = min(max_tb, _round_up(B, 8))
        # Keep >= 2 "parallel" grid tiles when batch allows, so v7x's second
        # TensorCore is not idle when there is only one N tile.
        if nj == 1 and B >= 16:
            TB = min(TB, _round_up(_round_up(B, 8) // 2, 8))
        Bpad = _round_up(B, TB)
        ni = Bpad // TB

        x2 = x.reshape(B, -1)
        x2 = jnp.pad(x2, ((0, Bpad - B), (0, Kpad - x2.shape[1])))

        out = pl.pallas_call(
            kernel,
            out_shape=jax.ShapeDtypeStruct((Bpad, Npad), jnp.float32),
            grid_spec=pltpu.PrefetchScalarGridSpec(
                num_scalar_prefetch=0,
                grid=(ni, nj, nk),
                in_specs=[
                    pl.BlockSpec((TB, TK), lambda i, j, k: (i, k)),   # x
                    pl.BlockSpec((1, TK), lambda i, j, k: (0, k)),    # mean
                    pl.BlockSpec((1, TK), lambda i, j, k: (0, k)),    # 1/std
                    pl.BlockSpec((TK, TN), lambda i, j, k: (k, j)),   # W
                    pl.BlockSpec((1, TN), lambda i, j, k: (0, j)),    # b
                ],
                out_specs=pl.BlockSpec((TB, TN), lambda i, j, k: (i, j)),
            ),
            compiler_params=pltpu.CompilerParams(
                dimension_semantics=("parallel", "parallel", "arbitrary"),
                vmem_limit_bytes=48 * 1024 * 1024),
        )(x2, mean_flat, inv_std_flat, w_p, b_p)

        return out[:B, :N]

    return forward


if __name__ == "__main__":
    key = jax.random.PRNGKey(0)
    B, C, H, W = 2, 4, 16, 16
    N_CLASSES = 16

    k_x, k_w, k_b = jax.random.split(key, 3)
    x = jax.random.normal(k_x, (B, C, H, W), dtype=jnp.float32)

    # Deterministic per-channel normalization stats (non-learned buffers).
    mean = jnp.array([0.485, 0.456, 0.406, 0.500],
                     dtype=jnp.float32).reshape(C, 1, 1)
    std = jnp.array([0.229, 0.224, 0.225, 0.250],
                    dtype=jnp.float32).reshape(C, 1, 1)

    # Deterministic synthetic "model" params (simple linear head).
    w = jax.random.normal(k_w, (C * H * W, N_CLASSES), dtype=jnp.float32) * 0.02
    b = jax.random.normal(k_b, (N_CLASSES,), dtype=jnp.float32) * 0.1

    # Pure-JAX reference of the module forward: normalize, then model.
    ref = ((x - mean) / std).reshape(B, -1) @ w + b

    # Production path: bf16 MXU operands (cast once at setup), f32 accumulation.
    fwd_bf16 = make_normalized_linear(mean, std, w, b, dot_dtype=jnp.bfloat16)
    out = jax.block_until_ready(fwd_bf16(x))
    assert out.shape == (B, N_CLASSES)
    assert jnp.allclose(out, ref, atol=5e-2, rtol=5e-2), "bf16 path mismatch"

    # f32-operand path for a tight numerical check against the reference.
    fwd_f32 = make_normalized_linear(mean, std, w, b, dot_dtype=jnp.float32)
    out32 = jax.block_until_ready(fwd_f32(x))
    assert jnp.allclose(out32, ref, atol=1e-3, rtol=1e-3), "f32 path mismatch"

    print("KERNEL_OK")
</pallas_src>

<mosaic_0001>
module attributes {stable_mosaic.version = 11 : i64} {
  func.func @kernel(%arg0: i32, %arg1: i32, %arg2: i32, %arg3: memref<8x1024xf32, #tpu.memory_space<vmem>>, %arg4: memref<1x1024xf32, #tpu.memory_space<vmem>>, %arg5: memref<1x1024xf32, #tpu.memory_space<vmem>>, %arg6: memref<1024x16xbf16, #tpu.memory_space<vmem>>, %arg7: memref<1x16xf32, #tpu.memory_space<vmem>>, %arg8: memref<8x16xf32, #tpu.memory_space<vmem>>) attributes {dimension_semantics = [#tpu.dimension_semantics<parallel>, #tpu.dimension_semantics<parallel>, #tpu.dimension_semantics<arbitrary>], iteration_bounds = array<i64: 1, 1, 1>, scalar_prefetch = 0 : i64, scratch_operands = 0 : i64, tpu.core_type = #tpu.core_type<tc>, window_params = [{transform_indices = @transform_0, window_bounds = array<i64: 8, 1024>}, {transform_indices = @transform_1, window_bounds = array<i64: 1, 1024>}, {transform_indices = @transform_2, window_bounds = array<i64: 1, 1024>}, {transform_indices = @transform_3, window_bounds = array<i64: 1024, 16>}, {transform_indices = @transform_4, window_bounds = array<i64: 1, 16>}, {transform_indices = @transform_5, window_bounds = array<i64: 8, 16>}]} {
    %c0 = arith.constant 0 : index
    %c0_0 = arith.constant 0 : index
    %0 = vector.load %arg3[%c0, %c0_0] : memref<8x1024xf32, #tpu.memory_space<vmem>>, vector<8x1024xf32>
    %c0_1 = arith.constant 0 : index
    %c0_2 = arith.constant 0 : index
    %1 = vector.load %arg4[%c0_1, %c0_2] : memref<1x1024xf32, #tpu.memory_space<vmem>>, vector<1x1024xf32>
    %2 = vector.broadcast %1 : vector<1x1024xf32> to vector<8x1024xf32>
    %3 = arith.subf %0, %2 : vector<8x1024xf32>
    %c0_3 = arith.constant 0 : index
    %c0_4 = arith.constant 0 : index
    %4 = vector.load %arg5[%c0_3, %c0_4] : memref<1x1024xf32, #tpu.memory_space<vmem>>, vector<1x1024xf32>
    %5 = vector.broadcast %4 : vector<1x1024xf32> to vector<8x1024xf32>
    %6 = arith.mulf %3, %5 : vector<8x1024xf32>
    %7 = arith.truncf %6 : vector<8x1024xf32> to vector<8x1024xbf16>
    %c0_5 = arith.constant 0 : index
    %c0_6 = arith.constant 0 : index
    %8 = vector.load %arg6[%c0_5, %c0_6] : memref<1024x16xbf16, #tpu.memory_space<vmem>>, vector<1024x16xbf16>
    %cst = arith.constant dense<0.000000e+00> : vector<8x16xf32>
    %9 = tpu.matmul %7, %8, %cst {dimension_numbers = #tpu.dot_dimension_numbers<[1], [0], [0], [1], [0, 0, 1, 1], [], []>} : vector<8x1024xbf16>, vector<1024x16xbf16>, vector<8x16xf32> -> vector<8x16xf32>
    %c0_7 = arith.constant 0 : index
    %c0_8 = arith.constant 0 : index
    %10 = vector.load %arg7[%c0_7, %c0_8] : memref<1x16xf32, #tpu.memory_space<vmem>>, vector<1x16xf32>
    %11 = vector.broadcast %10 : vector<1x16xf32> to vector<8x16xf32>
    %12 = arith.addf %9, %11 : vector<8x16xf32>
    %c0_9 = arith.constant 0 : index
    %c0_10 = arith.constant 0 : index
    %13 = vector.load %arg8[%c0_9, %c0_10] : memref<8x16xf32, #tpu.memory_space<vmem>>, vector<8x16xf32>
    tpu.vector_store %arg8[%c0_9, %c0_10], %12 {strides = array<i32>} : memref<8x16xf32, #tpu.memory_space<vmem>>, vector<8x16xf32>,
    return
  }
  func.func @transform_0(%arg0: i32, %arg1: i32, %arg2: i32) -> (i32, i32) {
    %c0_i32 = arith.constant 0 : i32
    return %arg0, %arg2 : i32, i32
  }
  func.func @transform_1(%arg0: i32, %arg1: i32, %arg2: i32) -> (i32, i32) {
    %c0_i32 = arith.constant 0 : i32
    %c0_i32_0 = arith.constant 0 : i32
    return %c0_i32, %arg2 : i32, i32
  }
  func.func @transform_2(%arg0: i32, %arg1: i32, %arg2: i32) -> (i32, i32) {
    %c0_i32 = arith.constant 0 : i32
    %c0_i32_0 = arith.constant 0 : i32
    return %c0_i32, %arg2 : i32, i32
  }
  func.func @transform_3(%arg0: i32, %arg1: i32, %arg2: i32) -> (i32, i32) {
    %c0_i32 = arith.constant 0 : i32
    return %arg2, %arg1 : i32, i32
  }
  func.func @transform_4(%arg0: i32, %arg1: i32, %arg2: i32) -> (i32, i32) {
    %c0_i32 = arith.constant 0 : i32
    %c0_i32_0 = arith.constant 0 : i32
    return %c0_i32, %arg1 : i32, i32
  }
  func.func @transform_5(%arg0: i32, %arg1: i32, %arg2: i32) -> (i32, i32) {
    %c0_i32 = arith.constant 0 : i32
    return %arg0, %arg1 : i32, i32
  }
}

</mosaic_0001>

<bundles_post_ra>
// kernel: forward.1
= control target key start
LH: loop header
LB: loop body
LE: loop exit
PB: predicated region body
PF: predicated region fallthrough
CT: control target
= control target key end

     0   :  { %10 = vsyncpa [#allocation3], 0  ;;  %s1079_s18 = smov [#allocation2]   ;;  %s1181_s0 = inlined_call_operand.vmem [shape: f32[8,1024], index: 0, kind: input, shape index: {}]   ;;  %s1182_s1 = inlined_call_operand.vmem [shape: f32[1,1024], index: 1, kind: input, shape index: {}]   ;;  %s1183_s2 = inlined_call_operand.vmem [shape: f32[1,1024], index: 2, kind: input, shape index: {}]   ;;  %s1184_s3 = inlined_call_operand.hbm [shape: bf16[1024,16], index: 3, kind: input, shape index: {}]   ;;  %s1185_s4 = inlined_call_operand.vmem [shape: f32[1,16], index: 4, kind: input, shape index: {}]   ;;  %s1186_s5 = inlined_call_operand.vmem [shape: f32[8,16], index: 5, kind: output, shape index: {}]  }
   0x1   :  { %s22_s19 = sshll.u32 %s1079_s18, 4  ;;  %s23_s19 = int_to_ptr.vmem [resolvable:$true] %s22_s19 }
   0x2   :  { %s1065_s20 = scalar_lea.vmem %s23_s19, 8192  ;;  %p1070_p1 = scmp.lt.s32.totalorder %s23_s19, %s23_s19 }
   0x3   :  { %p1066_p0 = scmp.ne.s32.totalorder %s23_s19, %s1065_s20  ;;  %p1071_p2 = scmp.lt.s32.totalorder %s1065_s20, %s1065_s20 }
   0x5   :  { %p1072_p3 = por %p1071_p2, %p1070_p1 }
   0x7   :  { %p1073_p4 = pnand %p1072_p3, %p1066_p0 }
   0x9   :  { %1076 = shalt.err (!%p1073_p4)
}
   0xa   :  { %s1080_s21 = smov 64   ;;  %s1081_s22 = smov 4  }
   0xb   :  { %28 = dma.hbm_to_vmem [thread:$0]  %s1184_s3, 8192, %s23_s19, [#allocation3], %s1080_s21, %s1080_s21, %s1081_s22  }
   0xc   :  { %1077 = dma.done.wait [#allocation3], 8192  }
   0xd   :  { %1078 = vsyncadd [#allocation3], 4294959104  ;;  %v993_v0 = vld [vmem:[#allocation2 + $0x78] sm:$0xff]   ;;  %v997_v4 = vld [vmem:[#allocation2 + $0x70] sm:$0xff]   ;;  %v45_v20 = vlaneseq  ;;  %vm830_vm0 = vcmask 130048  }
   0xe   :  { %v994_v1 = vld [vmem:[#allocation2 + $0xf8] sm:$0xff]   ;;  %902 = vmatprep.subr.bf16.mxu0 %v993_v0  ;;  %v998_v5 = vld [vmem:[#allocation2 + $0xf0] sm:$0xff]   ;;  %v1001_v8 = vld [vmem:[#allocation2 + $0x68] sm:$0xff]  }
   0xf   :  { %v995_v2 = vld [vmem:[#allocation2 + $0x38] sm:$0xff]   ;;  %924 = vmatprep.subr.bf16.mxu1 %v994_v1  ;;  %v999_v6 = vld [vmem:[#allocation2 + $0x30] sm:$0xff]   ;;  %v1002_v9 = vld [vmem:[#allocation2 + $0xe8] sm:$0xff]   ;;  %v1115_v25 = vshrl.u32 %v45_v20, 7 }
  0x10   :  { %v996_v3 = vld [vmem:[#allocation2 + $0xb8] sm:$0xff]   ;;  %903 = vmatpush3.bf16.msra.mxu0 %v995_v2  ;;  %v1000_v7 = vld [vmem:[#allocation2 + $0xb0] sm:$0xff]   ;;  %v1003_v10 = vld [vmem:[#allocation2 + $0x28] sm:$0xff]  }
  0x11   :  { %925 = vmatpush3.bf16.msra.mxu1 %v996_v3  ;;  %904 = vmatprep.subr.bf16.mxu0 %v997_v4  ;;  %v1004_v11 = vld [vmem:[#allocation2 + $0xa8] sm:$0xff]   ;;  %v1005_v12 = vld [vmem:[#allocation2 + $0x60] sm:$0xff]   ;;  %v1009_v16 = vld [vmem:[#allocation2 + $0x58] sm:$0xff]   ;;  %v51_v30 = vsub.s32 1, %v1115_v25  ;;  %v59_v32 = vsub.s32 3, %v1115_v25  ;;  %v47_v34 = vsub.s32 0, %v1115_v25 }
  0x12   :  { %926 = vmatprep.subr.bf16.mxu1 %v998_v5  ;;  %v1006_v13 = vld [vmem:[#allocation2 + $0xe0] sm:$0xff]   ;;  %v1010_v17 = vld [vmem:[#allocation2 + $0xd8] sm:$0xff]   ;;  %v1013_v21 = vld [vmem:[#allocation2 + $0x50] sm:$0xff]   ;;  %v55_v36 = vsub.s32 2, %v1115_v25 }
  0x13   :  { %v1007_v14 = vld [vmem:[#allocation2 + $0x20] sm:$0xff]   ;;  %v1011_v18 = vld [vmem:[#allocation2 + $0x18] sm:$0xff]   ;;  %v1014_v22 = vld [vmem:[#allocation2 + $0xd0] sm:$0xff]  }
  0x14   :  { %905 = vmatpush3.bf16.msra.mxu0 %v999_v6  ;;  %v1008_v15 = vld [vmem:[#allocation2 + $0xa0] sm:$0xff]   ;;  %v1012_v19 = vld [vmem:[#allocation2 + $0x98] sm:$0xff]   ;;  %v1015_v23 = vld [vmem:[#allocation2 + $0x10] sm:$0xff]  }
  0x15   :  { %927 = vmatpush3.bf16.msra.mxu1 %v1000_v7  ;;  %906 = vmatprep.subr.bf16.mxu0 %v1001_v8  ;;  %v1016_v24 = vld [vmem:[#allocation2 + $0x90] sm:$0xff]   ;;  %v1017_v26 = vld [vmem:[#allocation2 + $0x48] sm:$0xff]   ;;  %v1021_v31 = vld [vmem:[#allocation2 + $0x40] sm:$0xff]  }
  0x16   :  { %928 = vmatprep.subr.bf16.mxu1 %v1002_v9  ;;  %v1018_v27 = vld [vmem:[#allocation2 + $0xc8] sm:$0xff]   ;;  %v1022_v33 = vld [vmem:[#allocation2 + $0xc0] sm:$0xff]   ;;  %v38_v43 = vld [vmem:[%s1181_s0 + $0x18] sm:$0xff] }
  0x17   :  { %v1019_v28 = vld [vmem:[#allocation2 + $0x8] sm:$0xff]   ;;  %v1023_v35 = vld [vmem:[#allocation2] sm:$0xff]   ;;  %v37_v47 = vld [vmem:[%s1181_s0 + $0x10] sm:$0xff] }
  0x18   :  { %907 = vmatpush3.bf16.msra.mxu0 %v1003_v10  ;;  %v1020_v29 = vld [vmem:[#allocation2 + $0x88] sm:$0xff]   ;;  %v1024_v37 = vld [vmem:[#allocation2 + $0x80] sm:$0xff]   ;;  %v1025_v52 = vld [vmem:[#allocation2 + $0x178] sm:$0xff]  }
  0x19   :  { %929 = vmatpush3.bf16.msra.mxu1 %v1004_v11  ;;  %908 = vmatprep.subr.bf16.mxu0 %v1005_v12  ;;  %v36_v38 = vld [vmem:[%s1181_s0 + $0x8] sm:$0xff]  ;;  %v1127_v39 = vld [vmem:[%s1182_s1] sm:$0xff]  ;;  %v1026_v55 = vld [vmem:[#allocation2 + $0x1f8] sm:$0xff]  }
  0x1a   :  { %930 = vmatprep.subr.bf16.mxu1 %v1006_v13  ;;  %v1132_v40 = vld [vmem:[%s1183_s2] sm:$0xff]  ;;  %v52_v41 = vrot.slane %v1127_v39, %v51_v30  ;;  %v60_v44 = vrot.slane %v1127_v39, %v59_v32  ;;  %v48_v48 = vrot.slane %v1127_v39, %v47_v34  ;;  %v56_v50 = vrot.slane %v1127_v39, %v55_v36  ;;  %v1027_v60 = vld [vmem:[#allocation2 + $0x138] sm:$0xff]   ;;  %v1029_v2 = vld [vmem:[#allocation2 + $0x170] sm:$0xff]  }
  0x1b   :  { %v102_v42 = vrot.slane %v1132_v40, %v51_v30  ;;  %v110_v45 = vrot.slane %v1132_v40, %v59_v32  ;;  %v35_v46 = vld [vmem:[%s1181_s0] sm:$0xff]  ;;  %v98_v49 = vrot.slane %v1132_v40, %v47_v34  ;;  %v106_v51 = vrot.slane %v1132_v40, %v55_v36  ;;  %v1028_v63 = vld [vmem:[#allocation2 + $0x1b8] sm:$0xff]   ;;  %v1030_v5 = vld [vmem:[#allocation2 + $0x1f0] sm:$0xff]  }
  0x1c   :  { %909 = vmatpush3.bf16.msra.mxu0 %v1007_v14  ;;  %v86_v53 = vsub.f32 %v36_v38, %v52_v41  ;;  %v88_v54 = vsub.f32 %v38_v43, %v60_v44  ;;  %v85_v56 = vsub.f32 %v35_v46, %v48_v48  ;;  %v87_v57 = vsub.f32 %v37_v47, %v56_v50  ;;  %v1031_v6 = vld [vmem:[#allocation2 + $0x130] sm:$0xff]   ;;  %v1033_v8 = vld [vmem:[#allocation2 + $0x168] sm:$0xff]   ;;  %v1037_v12 = vld [vmem:[#allocation2 + $0x160] sm:$0xff]  }
  0x1d   :  { %931 = vmatpush3.bf16.msra.mxu1 %v1008_v15  ;;  %910 = vmatprep.subr.bf16.mxu0 %v1009_v16  ;;  %v1032_v7 = vld [vmem:[#allocation2 + $0x1b0] sm:$0xff]   ;;  %v1034_v9 = vld [vmem:[#allocation2 + $0x1e8] sm:$0xff]   ;;  %v1038_v13 = vld [vmem:[#allocation2 + $0x1e0] sm:$0xff]   ;;  %v71_v30 = vsub.s32 6, %v1115_v25 }
  0x1e   :  { %932 = vmatprep.subr.bf16.mxu1 %v1010_v17  ;;  %v136_v58 = vmul.f32 %v102_v42, %v86_v53  ;;  %v138_v59 = vmul.f32 %v110_v45, %v88_v54  ;;  %v135_v61 = vmul.f32 %v98_v49, %v85_v56  ;;  %v137_v62 = vmul.f32 %v106_v51, %v87_v57  ;;  %v1035_v10 = vld [vmem:[#allocation2 + $0x128] sm:$0xff]   ;;  %v1039_v14 = vld [vmem:[#allocation2 + $0x120] sm:$0xff]   ;;  %v1041_v16 = vld [vmem:[#allocation2 + $0x158] sm:$0xff]  }
  0x1f   :  { %v1036_v11 = vld [vmem:[#allocation2 + $0x1a8] sm:$0xff]   ;;  %v1040_v15 = vld [vmem:[#allocation2 + $0x1a0] sm:$0xff]   ;;  %v1042_v17 = vld [vmem:[#allocation2 + $0x1d8] sm:$0xff]   ;;  %v72_v38 = vrot.slane %v1127_v39, %v71_v30 }
  0x20   :  { %911 = vmatpush3.bf16.msra.mxu0 %v1011_v18  ;;  %v144_v0 = vpack.c.bf16 %v136_v58, %v136_v58  ;;  %v146_v1 = vpack.c.bf16 %v138_v59, %v138_v59  ;;  %v143_v3 = vpack.c.bf16 %v135_v61, %v135_v61  ;;  %v145_v4 = vpack.c.bf16 %v137_v62, %v137_v62  ;;  %v1043_v18 = vld [vmem:[#allocation2 + $0x118] sm:$0xff]   ;;  %v1045_v20 = vld [vmem:[#allocation2 + $0x150] sm:$0xff]   ;;  %v1052_v32 = vld [vmem:[#allocation2 + $0x188] sm:$0xff]  }
  0x21   :  { %933 = vmatpush3.bf16.msra.mxu1 %v1012_v19  ;;  %912 = vmatprep.subr.bf16.mxu0 %v1013_v21  ;;  %v1044_v19 = vld [vmem:[#allocation2 + $0x198] sm:$0xff]   ;;  %v1046_v21 = vld [vmem:[#allocation2 + $0x1d0] sm:$0xff]   ;;  %v40_v43 = vld [vmem:[%s1181_s0 + $0x28] sm:$0xff] }
  0x22   :  { %934 = vmatprep.subr.bf16.mxu1 %v1014_v22  ;;  %702 = vmatprep.mubr.bf16.mxu0 %v144_v0  ;;  %v1047_v22 = vld [vmem:[#allocation2 + $0x110] sm:$0xff]   ;;  %v42_v44 = vld [vmem:[%s1181_s0 + $0x38] sm:$0xff]  ;;  %v39_v45 = vld [vmem:[%s1181_s0 + $0x20] sm:$0xff] }
  0x23   :  { %742 = vmatprep.mubr.bf16.mxu1 %v146_v1  ;;  %v1055_v46 = vld [vmem:[#allocation2 + $0x100] sm:$0xff]   ;;  %v41_v51 = vld [vmem:[%s1181_s0 + $0x30] sm:$0xff] }
  0x24   :  { %913 = vmatpush3.bf16.msra.mxu0 %v1015_v23  ;;  %v67_v23 = vsub.s32 5, %v1115_v25  ;;  %v1056_v47 = vld [vmem:[#allocation2 + $0x180] sm:$0xff]  }
  0x25   :  { %935 = vmatpush3.bf16.msra.mxu1 %v1016_v24  ;;  %914 = vmatprep.subr.bf16.mxu0 %v1017_v26  ;;  %v1048_v24 = vld [vmem:[#allocation2 + $0x190] sm:$0xff]   ;;  %v75_v26 = vsub.s32 7, %v1115_v25 }
  0x26   :  { %936 = vmatprep.subr.bf16.mxu1 %v1018_v27  ;;  %v1049_v27 = vld [vmem:[#allocation2 + $0x148] sm:$0xff]   ;;  %v68_v34 = vrot.slane %v1127_v39, %v67_v23  ;;  %v118_v41 = vrot.slane %v1132_v40, %v67_v23 }
  0x28   :  { %915 = vmatpush3.bf16.msra.mxu0 %v1019_v28  ;;  %v63_v28 = vsub.s32 4, %v1115_v25  ;;  %v126_v25 = vrot.slane %v1132_v40, %v75_v26  ;;  %v90_v48 = vsub.f32 %v40_v43, %v68_v34 }
  0x29   :  { %937 = vmatpush3.bf16.msra.mxu1 %v1020_v29  ;;  %916 = vmatprep.subr.bf16.mxu0 %v1021_v31  ;;  %v1050_v29 = vld [vmem:[#allocation2 + $0x1c8] sm:$0xff]  }
  0x2a   :  { %938 = vmatprep.subr.bf16.mxu1 %v1022_v33  ;;  %v1051_v31 = vld [vmem:[#allocation2 + $0x108] sm:$0xff]   ;;  %v1053_v33 = vld [vmem:[#allocation2 + $0x140] sm:$0xff]   ;;  %v64_v36 = vrot.slane %v1127_v39, %v63_v28  ;;  %v114_v42 = vrot.slane %v1132_v40, %v63_v28  ;;  %v140_v53 = vmul.f32 %v118_v41, %v90_v48 }
  0x2c   :  { %917 = vmatpush3.bf16.msra.mxu0 %v1023_v35  ;;  %v76_v35 = vrot.slane %v1127_v39, %v75_v26  ;;  %v122_v39 = vrot.slane %v1132_v40, %v71_v30  ;;  %v89_v50 = vsub.f32 %v39_v45, %v64_v36  ;;  %v148_v40 = vpack.c.bf16 %v140_v53, %v140_v53 }
  0x2d   :  { %939 = vmatpush3.bf16.msra.mxu1 %v1024_v37  ;;  %946 = vmatprep.subr.bf16.mxu0 %v1025_v52  ;;  %v1054_v37 = vld [vmem:[#allocation2 + $0x1c0] sm:$0xff]   ;;  %v91_v52 = vsub.f32 %v41_v51, %v72_v38 }
  0x2e   :  { %968 = vmatprep.subr.bf16.mxu1 %v1026_v55  ;;  %v92_v49 = vsub.f32 %v42_v44, %v76_v35  ;;  %v139_v55 = vmul.f32 %v114_v42, %v89_v50 }
  0x2f   :  { %703 = vmatmul.mubr.bf16.vlgmr.msra.gmra.mxu0 %v143_v3  ;;  %v141_v56 = vmul.f32 %v122_v39, %v91_v52 }
  0x30   :  { %743 = vmatmul.mubr.bf16.vlgmr.msra.gmra.mxu1 %v145_v4  ;;  %947 = vmatpush3.bf16.msra.mxu0 %v1027_v60  ;;  %v142_v54 = vmul.f32 %v126_v25, %v92_v49  ;;  %v147_v58 = vpack.c.bf16 %v139_v55, %v139_v55 }
  0x31   :  { %969 = vmatpush3.bf16.msra.mxu1 %v1028_v63  ;;  %948 = vmatprep.subr.bf16.mxu0 %v1029_v2  ;;  %v149_v59 = vpack.c.bf16 %v141_v56, %v141_v56 }
  0x32   :  { %970 = vmatprep.subr.bf16.mxu1 %v1030_v5  ;;  %v150_v57 = vpack.c.bf16 %v142_v54, %v142_v54  ;;  %782 = vmatprep.mubr.bf16.mxu0 %v148_v40  ;;  %v837_v5 = vld [vmem:[%s1185_s4] ss:$0 sm:$0xff] }
  0x34   :  { %949 = vmatpush3.bf16.msra.mxu0 %v1031_v6  ;;  %822 = vmatprep.mubr.bf16.mxu1 %v150_v57 }
  0x35   :  { %971 = vmatpush3.bf16.msra.mxu1 %v1032_v7  ;;  %950 = vmatprep.subr.bf16.mxu0 %v1033_v8 }
  0x36   :  { %972 = vmatprep.subr.bf16.mxu1 %v1034_v9 }
  0x38   :  { %951 = vmatpush3.bf16.msra.mxu0 %v1035_v10 }
  0x39   :  { %973 = vmatpush3.bf16.msra.mxu1 %v1036_v11  ;;  %952 = vmatprep.subr.bf16.mxu0 %v1037_v12 }
  0x3a   :  { %974 = vmatprep.subr.bf16.mxu1 %v1038_v13 }
  0x3c   :  { %953 = vmatpush3.bf16.msra.mxu0 %v1039_v14 }
  0x3d   :  { %975 = vmatpush3.bf16.msra.mxu1 %v1040_v15  ;;  %954 = vmatprep.subr.bf16.mxu0 %v1041_v16 }
  0x3e   :  { %976 = vmatprep.subr.bf16.mxu1 %v1042_v17 }
  0x40   :  { %955 = vmatpush3.bf16.msra.mxu0 %v1043_v18 }
  0x41   :  { %977 = vmatpush3.bf16.msra.mxu1 %v1044_v19  ;;  %956 = vmatprep.subr.bf16.mxu0 %v1045_v20 }
  0x42   :  { %978 = vmatprep.subr.bf16.mxu1 %v1046_v21 }
  0x44   :  { %957 = vmatpush3.bf16.msra.mxu0 %v1047_v22 }
  0x45   :  { %979 = vmatpush3.bf16.msra.mxu1 %v1048_v24  ;;  %958 = vmatprep.subr.bf16.mxu0 %v1049_v27 }
  0x46   :  { %980 = vmatprep.subr.bf16.mxu1 %v1050_v29 }
  0x48   :  { %959 = vmatpush3.bf16.msra.mxu0 %v1051_v31 }
  0x49   :  { %981 = vmatpush3.bf16.msra.mxu1 %v1052_v32  ;;  %960 = vmatprep.subr.bf16.mxu0 %v1053_v33 }
  0x4a   :  { %982 = vmatprep.subr.bf16.mxu1 %v1054_v37 }
  0x4c   :  { %961 = vmatpush3.bf16.msra.mxu0 %v1055_v46 }
  0x4d   :  { %983 = vmatpush3.bf16.msra.mxu1 %v1056_v47 }
  0x4f   :  { %783 = vmatmul.mubr.bf16.vlgmr.msra.gmra.mxu0 %v147_v58 }
  0x50   :  { %823 = vmatmul.mubr.bf16.vlgmr.msra.gmra.mxu1 %v149_v59 }
  0xef   :  { %v918_v60 = vpop.f32.mrf.mxu0 }
  0xf0   :  { %v940_v61 = vpop.f32.mrf.mxu1 }
  0xf1   :  { %v919_v62 = vpop.f32.mrf.mxu0 }
  0xf2   :  { %v941_v63 = vpop.f32.mrf.mxu1  ;;  %v920_v4 = vadd.f32 %v919_v62, %v918_v60 }
  0xf3   :  { %v921_v0 = vpop.f32.mrf.mxu0  ;;  %v942_v7 = vadd.f32 %v941_v63, %v940_v61 }
  0xf4   :  { %v943_v1 = vpop.f32.mrf.mxu1  ;;  %v705_v6 = vadd.f32 %v920_v4, %v837_v5 }
  0xf5   :  { %v922_v2 = vpop.f32.mrf.mxu0 }
  0xf6   :  { %v944_v3 = vpop.f32.mrf.mxu1  ;;  %v745_v12 = vadd.f32 %v942_v7, %v705_v6 }
 0x10f   :  { %v962_v8 = vpop.f32.mrf.mxu0 }
 0x110   :  { %v984_v9 = vpop.f32.mrf.mxu1 }
 0x111   :  { %v963_v10 = vpop.f32.mrf.mxu0 }
 0x112   :  { %v985_v11 = vpop.f32.mrf.mxu1  ;;  %v964_v13 = vadd.f32 %v963_v10, %v962_v8 }
 0x113   :  { %v965_v14 = vpop.f32.mrf.mxu0  ;;  %v986_v17 = vadd.f32 %v985_v11, %v984_v9 }
 0x114   :  { %v987_v15 = vpop.f32.mrf.mxu1  ;;  %v785_v16 = vadd.f32 %v964_v13, %v745_v12 }
 0x115   :  { %v966_v18 = vpop.f32.mrf.mxu0 }
 0x116   :  { %v988_v19 = vpop.f32.mrf.mxu1  ;;  %v825_v20 = vadd.f32 %v986_v17, %v785_v16 }
 0x118   :  { %831 = vst.msk [vmem:[%s1186_s5] sm:$0xff] %vm830_vm0, %v825_v20 }
 0x119   :  { %836 = vsyncpa [#allocation3], 1 }

</bundles_post_ra>
